<compile_context>
chip_gen: v7x
topology: tpu7x:2x2x1
jax: 0.10.0
libtpu: 0.0.40
codegen_flags: <defaults>
</compile_context>

<pallas_src>
import functools

import jax
import jax.numpy as jnp
from jax.experimental import pallas as pl
from jax.experimental.pallas import tpu as pltpu

HIDDEN = 30       # fc1 output features
PACK_ROWS = 32    # hidden padded up to a sublane multiple (8)
_LANES = 128


def mlp_kernel(p_ref, x_ref, o_ref):
    """One batch tile: (1, Bt) in -> (1, Bt) out, batch on the lane axis.

    p_ref layout (32, 4) f32, zero-padded past row 29:
      col 0 = fc1.weight, col 1 = fc1.bias, col 2 = fc2.weight, [0,3] = fc2.bias
    """
    p = p_ref[...]                       # (32, 4)
    w1 = p[:, 0:1]                       # (32, 1)
    b1 = p[:, 1:2]                       # (32, 1)
    w2 = p[:, 2:3]                       # (32, 1)
    b2 = p[0:1, 3:4]                     # (1, 1)

    x = x_ref[...]                       # (1, Bt)  batch on lanes
    # fc1 + ReLU: outer product over the 32 (padded) hidden rows -> fully
    # sublane-dense VPU work on a (32, Bt) intermediate.
    h = jnp.maximum(w1 * x + b1, 0.0)    # (32, Bt)
    # fc2: padded rows are relu(0)*0 == 0, so reducing all 32 rows is exact.
    y = jnp.sum(h * w2, axis=0, keepdims=True) + b2   # (1, Bt) sublane reduce (XLU)
    o_ref[...] = y.astype(o_ref.dtype)


def _pack_params(w1, b1, w2, b2):
    """Pack PyTorch-layout params into a single (32, 4) f32 slab (one DMA)."""
    p = jnp.zeros((PACK_ROWS, 4), jnp.float32)
    p = p.at[:HIDDEN, 0].set(w1[:, 0].astype(jnp.float32))   # fc1.weight (30, 1)
    p = p.at[:HIDDEN, 1].set(b1.astype(jnp.float32))         # fc1.bias   (30,)
    p = p.at[:HIDDEN, 2].set(w2[0, :].astype(jnp.float32))   # fc2.weight (1, 30)
    p = p.at[0, 3].set(b2[0].astype(jnp.float32))            # fc2.bias   (1,)
    return p


@functools.partial(jax.jit, static_argnames=("block_b",))
def neural_network_forward(x, w1, b1, w2, b2, *, block_b=16384):
    """y = fc2(relu(fc1(x))) with PyTorch-convention parameter shapes.

    x: (B, 1); w1: (30, 1); b1: (30,); w2: (1, 30); b2: (1,)  ->  (B, 1)
    """
    B = x.shape[0]
    x_t = x.reshape(1, B)            # free reshape: batch onto the lane axis
    params = _pack_params(w1, b1, w2, b2)

    if B <= block_b:
        # Single block equal to the full array: legal for any B, one grid step,
        # no padding, no edge masking.
        bt = B
        grid = 1
    else:
        # Lane-aligned tile; last (edge) block is masked by Pallas, so no
        # wrapper-side pad / slice is ever needed.
        bt = max(_LANES, (block_b // _LANES) * _LANES)
        grid = pl.cdiv(B, bt)

    out_t = pl.pallas_call(
        mlp_kernel,
        out_shape=jax.ShapeDtypeStruct((1, B), x.dtype),
        grid_spec=pltpu.PrefetchScalarGridSpec(
            num_scalar_prefetch=0,
            grid=(grid,),
            in_specs=[
                pl.BlockSpec((PACK_ROWS, 4), lambda i: (0, 0)),  # params: resident
                pl.BlockSpec((1, bt), lambda i: (0, i)),         # x tile
            ],
            out_specs=pl.BlockSpec((1, bt), lambda i: (0, i)),
        ),
        compiler_params=pltpu.CompilerParams(
            dimension_semantics=("parallel",),  # independent tiles -> megacore
        ),
    )(params, x_t)

    return out_t.reshape(B, 1)   # free reshape back to PyTorch (B, 1)


def init_params(key):
    """PyTorch nn.Linear default init (uniform +-1/sqrt(fan_in)), PyTorch layouts."""
    k1, k2, k3, k4 = jax.random.split(key, 4)
    bound1 = 1.0  # fan_in = 1
    w1 = jax.random.uniform(k1, (HIDDEN, 1), jnp.float32, -bound1, bound1)
    b1 = jax.random.uniform(k2, (HIDDEN,), jnp.float32, -bound1, bound1)
    bound2 = 1.0 / jnp.sqrt(float(HIDDEN))
    w2 = jax.random.uniform(k3, (1, HIDDEN), jnp.float32, -bound2, bound2)
    b2 = jax.random.uniform(k4, (1,), jnp.float32, -bound2, bound2)
    return w1, b1, w2, b2


def _reference(x, w1, b1, w2, b2):
    return jnp.maximum(x @ w1.T + b1, 0.0) @ w2.T + b2


# TODO(synk): training helpers (LearnModel*, SGD/MSELoss) and torch.save/load
# model persistence have no Pallas equivalent; only the forward pass is kernelized.

if __name__ == "__main__":
    key = jax.random.PRNGKey(0)
    kx, kp = jax.random.split(key)
    w1, b1, w2, b2 = init_params(kp)

    # 1) Tiny batch: single full-array block (1, 8), grid of 1, no padding.
    B = 8
    x = jax.random.normal(kx, (B, 1), jnp.float32)
    out = jax.block_until_ready(neural_network_forward(x, w1, b1, w2, b2))
    ref = _reference(x, w1, b1, w2, b2)
    assert out.shape == (B, 1)
    assert jnp.allclose(out, ref, atol=1e-5, rtol=1e-5)

    # 2) Non-multiple batch, single block (1, 1300) at the default tile size.
    B2 = 1300
    x2 = jax.random.normal(kx, (B2, 1), jnp.float32)
    out2 = jax.block_until_ready(neural_network_forward(x2, w1, b1, w2, b2))
    ref2 = _reference(x2, w1, b1, w2, b2)
    assert out2.shape == (B2, 1)
    assert jnp.allclose(out2, ref2, atol=1e-5, rtol=1e-5)

    # 3) Same batch with a small forced tile: exercises the multi-step grid and
    #    the masked ragged edge block (grid=3, last block only partially valid).
    out3 = jax.block_until_ready(
        neural_network_forward(x2, w1, b1, w2, b2, block_b=512))
    assert out3.shape == (B2, 1)
    assert jnp.allclose(out3, ref2, atol=1e-5, rtol=1e-5)

    print("KERNEL_OK")
</pallas_src>

<mosaic_0001>
module attributes {stable_mosaic.version = 11 : i64} {
  func.func @mlp_kernel(%arg0: i32, %arg1: memref<32x4xf32, #tpu.memory_space<vmem>>, %arg2: memref<1x8xf32, #tpu.memory_space<vmem>>, %arg3: memref<1x8xf32, #tpu.memory_space<vmem>>) attributes {dimension_semantics = [#tpu.dimension_semantics<parallel>], iteration_bounds = array<i64: 1>, scalar_prefetch = 0 : i64, scratch_operands = 0 : i64, tpu.core_type = #tpu.core_type<tc>, window_params = [{pipeline_mode = #tpu.pipeline_mode<synchronous>, transform_indices = @transform_0, window_bounds = array<i64: 32, 4>}, {transform_indices = @transform_1, window_bounds = array<i64: 1, 8>}, {transform_indices = @transform_2, window_bounds = array<i64: 1, 8>}]} {
    %c0 = arith.constant 0 : index
    %c0_0 = arith.constant 0 : index
    %0 = vector.load %arg1[%c0, %c0_0] : memref<32x4xf32, #tpu.memory_space<vmem>>, vector<32x4xf32>
    %1 = vector.extract_strided_slice %0 {offsets = [0, 0], sizes = [32, 1], strides = [1, 1]} : vector<32x4xf32> to vector<32x1xf32>
    %2 = vector.extract_strided_slice %0 {offsets = [0, 1], sizes = [32, 1], strides = [1, 1]} : vector<32x4xf32> to vector<32x1xf32>
    %3 = vector.extract_strided_slice %0 {offsets = [0, 2], sizes = [32, 1], strides = [1, 1]} : vector<32x4xf32> to vector<32x1xf32>
    %4 = vector.extract_strided_slice %0 {offsets = [0, 3], sizes = [1, 1], strides = [1, 1]} : vector<32x4xf32> to vector<1x1xf32>
    %c0_1 = arith.constant 0 : index
    %c0_2 = arith.constant 0 : index
    %5 = vector.load %arg2[%c0_1, %c0_2] : memref<1x8xf32, #tpu.memory_space<vmem>>, vector<1x8xf32>
    %6 = vector.broadcast %1 : vector<32x1xf32> to vector<32x8xf32>
    %7 = vector.broadcast %5 : vector<1x8xf32> to vector<32x8xf32>
    %8 = arith.mulf %6, %7 : vector<32x8xf32>
    %9 = vector.broadcast %2 : vector<32x1xf32> to vector<32x8xf32>
    %10 = arith.addf %8, %9 : vector<32x8xf32>
    %cst = arith.constant 0.000000e+00 : f32
    %11 = vector.broadcast %cst : f32 to vector<32x8xf32>
    %12 = arith.maximumf %10, %11 : vector<32x8xf32>
    %13 = vector.broadcast %3 : vector<32x1xf32> to vector<32x8xf32>
    %14 = arith.mulf %12, %13 : vector<32x8xf32>
    %cst_3 = arith.constant dense<0.000000e+00> : vector<8xf32>
    %15 = vector.multi_reduction <add>, %14, %cst_3 [0] : vector<32x8xf32> to vector<8xf32>
    %16 = vector.shape_cast %15 : vector<8xf32> to vector<1x8xf32>
    %17 = vector.broadcast %4 : vector<1x1xf32> to vector<1x8xf32>
    %18 = arith.addf %16, %17 : vector<1x8xf32>
    %c0_4 = arith.constant 0 : index
    %c0_5 = arith.constant 0 : index
    %19 = vector.load %arg3[%c0_4, %c0_5] : memref<1x8xf32, #tpu.memory_space<vmem>>, vector<1x8xf32>
    tpu.vector_store %arg3[%c0_4, %c0_5], %18 {strides = array<i32>} : memref<1x8xf32, #tpu.memory_space<vmem>>, vector<1x8xf32>,
    return
  }
  func.func @transform_0(%arg0: i32) -> (i32, i32) {
    %c0_i32 = arith.constant 0 : i32
    %c0_i32_0 = arith.constant 0 : i32
    %c0_i32_1 = arith.constant 0 : i32
    return %c0_i32, %c0_i32_0 : i32, i32
  }
  func.func @transform_1(%arg0: i32) -> (i32, i32) {
    %c0_i32 = arith.constant 0 : i32
    %c0_i32_0 = arith.constant 0 : i32
    return %c0_i32, %arg0 : i32, i32
  }
  func.func @transform_2(%arg0: i32) -> (i32, i32) {
    %c0_i32 = arith.constant 0 : i32
    %c0_i32_0 = arith.constant 0 : i32
    return %c0_i32, %arg0 : i32, i32
  }
}

</mosaic_0001>

<bundles_post_ra>
// kernel: neural_network_forward.1
= control target key start
LH: loop header
LB: loop body
LE: loop exit
PB: predicated region body
PF: predicated region fallthrough
CT: control target
= control target key end

     0   :  { %v165_v2 = vmov 0   ;;  %s212_s0 = inlined_call_operand.vmem [shape: f32[32,4], index: 0, kind: input, shape index: {}]   ;;  %s213_s1 = inlined_call_operand.vmem [shape: f32[1,8], index: 1, kind: input, shape index: {}]   ;;  %s214_s2 = inlined_call_operand.hbm [shape: f32[1,8], index: 2, kind: output, shape index: {}]  }
   0x1   :  { %v14_v0 = vld [vmem:[%s212_s0 + $0x10] sm:$0xff]  ;;  %v12_v1 = vld [vmem:[%s212_s0] sm:$0xff]  ;;  %133 = vset.pattern.permute.xlu1 %v165_v2  ;;  %132 = vset.pattern.permute.xlu0 %v165_v2 }
   0x2   :  { %7 = vsyncpa [#allocation3], 0  ;;  %29 = vperm.xlu1 %133, %v14_v0   ;;  %19 = vperm.xlu0 %132, %v12_v1   ;;  %v13_v3 = vld [vmem:[%s212_s0 + $0x8] sm:$0xff]  ;;  %v166_v4 = vmov 1   ;;  %v15_v5 = vld [vmem:[%s212_s0 + $0x18] sm:$0xff]  ;;  %v167_v6 = vmov 2  }
   0x3   :  { %v168_v7 = vmov 3   ;;  %v126_v13 = vld [vmem:[%s213_s1] ss:$0 sm:$0xff]  ;;  %vm91_vm0 = vcmask 64512   ;;  %s169_s1 = smov [#allocation2]   ;;  %vm110_vm1 = vcmask 57344  }
   0x4   :  { %s118_s18 = sshll.u32 %s169_s1, 4  ;;  %s119_s18 = int_to_ptr.vmem [resolvable:$true] %s118_s18 }
   0x5   :  { %s141_s19 = scalar_lea.vmem %s119_s18, 16  ;;  %s145_s20 = scalar_lea.vmem %s119_s18, 32 }
   0x6   :  { %134 = vset.pattern.permute.xlu1 %v166_v4  ;;  %24 = vperm.xlu0 %132, %v13_v3   ;;  %p142_p0 = scmp.ne.s32.totalorder %s119_s18, %s141_s19  ;;  %p146_p1 = scmp.lt.s32.totalorder %s119_s18, %s119_s18 }
   0x7   :  { %48 = vperm.xlu1 %134, %v12_v1   ;;  %p147_p2 = scmp.lt.s32.totalorder %s145_s20, %s141_s19 }
   0x9   :  { %p148_p3 = por %p147_p2, %p146_p1 }
   0xa   :  { %135 = vset.pattern.permute.xlu0 %v166_v4 }
   0xb   :  { %136 = vset.pattern.permute.xlu1 %v165_v2  ;;  %52 = vperm.xlu0 %135, %v13_v3   ;;  %p149_p4 = pnand %p148_p3, %p142_p0 }
   0xc   :  { %34 = vperm.xlu1 %136, %v15_v5  }
   0xf   :  { %60 = vperm.xlu0 %135, %v15_v5  }
  0x10   :  { %137 = vset.pattern.permute.xlu1 %v166_v4 }
  0x11   :  { %56 = vperm.xlu1 %137, %v14_v0  }
  0x13   :  { %139 = vset.pattern.permute.xlu0 %v167_v6 }
  0x14   :  { %76 = vperm.xlu0 %139, %v13_v3  }
  0x15   :  { %138 = vset.pattern.permute.xlu1 %v167_v6 }
  0x16   :  { %72 = vperm.xlu1 %138, %v12_v1  }
  0x18   :  { %140 = vset.pattern.permute.xlu0 %v168_v7 }
  0x19   :  { %106 = vperm.xlu0 %140, %v12_v1  }
  0x1a   :  { %80 = vperm.xlu1 %138, %v14_v0  }
  0x1e   :  { %84 = vperm.xlu1 %138, %v15_v5  }
  0x81   :  { %v30_v8 = vpop.permute.xlu1 %29  ;;  %v20_v9 = vpop.permute.xlu0 %19 }
  0x82   :  { %v43_v15 = vmul.f32 %v126_v13, %v20_v9  ;;  %v45_v20 = vmul.f32 %v126_v13, %v30_v8 }
  0x85   :  { %v25_v10 = vpop.permute.xlu0 %24 }
  0x86   :  { %v49_v11 = vpop.permute.xlu1 %48  ;;  %v44_v16 = vmul.f32 %v126_v13, %v25_v10 }
  0x87   :  { %v63_v18 = vadd.f32 %v49_v11, %v43_v15 }
  0x89   :  { %v67_v22 = vmax.f32 %v63_v18, 0.0 }
  0x8a   :  { %v53_v12 = vpop.permute.xlu0 %52 }
  0x8b   :  { %v35_v14 = vpop.permute.xlu1 %34  ;;  %v64_v21 = vadd.f32 %v53_v12, %v44_v16 }
  0x8c   :  { %v46_v23 = vmul.f32 %v126_v13, %v35_v14 }
  0x8d   :  { %v68_v27 = vmax.f32 %v64_v21, 0.0 }
  0x8e   :  { %v61_v17 = vpop.permute.xlu0 %60 }
  0x8f   :  { %v66_v29 = vadd.f32 %v61_v17, %v46_v23 }
  0x90   :  { %v57_v19 = vpop.permute.xlu1 %56 }
  0x91   :  { %v65_v24 = vadd.f32 %v57_v19, %v45_v20  ;;  %v70_v35 = vmax.f32 %v66_v29, 0.0 }
  0x93   :  { %v77_v25 = vpop.permute.xlu0 %76  ;;  %v69_v30 = vmax.f32 %v65_v24, 0.0 }
  0x94   :  { %v88_v31 = vmul.f32 %v77_v25, %v68_v27 }
  0x95   :  { %v73_v26 = vpop.permute.xlu1 %72 }
  0x96   :  { %v87_v28 = vmul.f32 %v73_v26, %v67_v22  ;;  %v93_v36 = vsel %vm91_vm0, %v88_v31, 0.0 }
  0x98   :  { %v92_v33 = vsel %vm91_vm0, %v87_v28, 0.0  ;;  %v107_v49 = vpop.permute.xlu0 %106 }
  0x99   :  { %v81_v32 = vpop.permute.xlu1 %80  ;;  %v94_v38 = vadd.f32 %v93_v36, %v92_v33 }
  0x9a   :  { %v89_v34 = vmul.f32 %v81_v32, %v69_v30 }
  0x9c   :  { %v95_v37 = vsel %vm91_vm0, %v89_v34, 0.0 }
  0x9d   :  { %v85_v39 = vpop.permute.xlu1 %84  ;;  %v96_v41 = vadd.f32 %v95_v37, %v94_v38 }
  0x9e   :  { %v90_v40 = vmul.f32 %v85_v39, %v70_v35 }
  0xa0   :  { %v97_v42 = vsel %vm91_vm0, %v90_v40, 0.0 }
  0xa1   :  { %v98_v43 = vadd.f32 %v97_v42, %v96_v41 }
  0xa3   :  { %v99_v44 = vrot.slane %v98_v43, 4 }
  0xa5   :  { %v100_v45 = vadd.f32 %v99_v44, %v98_v43 }
  0xa7   :  { %v101_v46 = vrot.slane %v100_v45, 2 }
  0xa9   :  { %v102_v47 = vadd.f32 %v101_v46, %v100_v45 }
  0xab   :  { %v103_v48 = vrot.slane %v102_v47, 1 }
  0xad   :  { %v104_v50 = vadd.f32 %v103_v48, %v102_v47 }
  0xaf   :  { %v109_v51 = vadd.f32 %v107_v49, %v104_v50 }
  0xb1   :  { %111 = vst.msk [vmem:[#allocation2] sm:$0x1] %vm110_vm1, %v109_v51 }
  0xb2   :  { %152 = shalt.err (!%p149_p4)
}
  0xb3   :  { %s153_s23 = scalar_lea.hbm %s214_s2, 16 }
  0xb4   :  { %p154_p5 = scmp.ne.s32.totalorder %s214_s2, %s153_s23  ;;  %p157_p6 = scmp.lt.u32.totalorder %s153_s23, %s214_s2 }
  0xb6   :  { %p159_p7 = pnand %p157_p6, %p154_p5 }
  0xb8   :  { %162 = shalt.err (!%p159_p7)
}
  0xb9   :  { %121 = dma.vmem_to_hbm [thread:$0]  %s119_s18, 16, %s214_s2, [#allocation3]  }
  0xba   :  { %163 = dma.done.wait [#allocation3], 16  }
  0xbb   :  { %164 = vsyncadd [#allocation3], 4294967280 }
  0xbc   :  { %125 = vsyncpa [#allocation3], 1 }

</bundles_post_ra>
